<compile_context>
chip_gen: v6e
topology: v6e:2x2x1
jax: 0.10.0
libtpu: 0.0.40
codegen_flags: <defaults>
</compile_context>

<pallas_src>
import jax
import jax.numpy as jnp
from jax.experimental import pallas as pl
from jax.experimental.pallas import tpu as pltpu

_LANE = 128  # TPU vreg lane width; batch tiles are multiples of this.


def _policy_kernel(obs_ref, w1_ref, b1_ref, w2_ref, b2_ref, w3_ref, b3_ref,
                   logstd_ref, noise_ref, act_ref):
    """All activations are (features, tile_b): batch on lanes (lane-dense)."""
    mm_dtype = w1_ref.dtype
    # Layer 1: (H, obs_dim) @ (obs_dim, TB) -> (H, TB), f32 accumulate + tanh.
    h1 = jnp.tanh(
        jnp.dot(w1_ref[...], obs_ref[...], preferred_element_type=jnp.float32)
        + b1_ref[...])
    # Layer 2: (H, H) @ (H, TB) -> (H, TB)
    h2 = jnp.tanh(
        jnp.dot(w2_ref[...], h1.astype(mm_dtype),
                preferred_element_type=jnp.float32)
        + b2_ref[...])
    # Mu head: (act_dim, H) @ (H, TB) -> (act_dim, TB), final tanh.
    mu = jnp.tanh(
        jnp.dot(w3_ref[...], h2.astype(mm_dtype),
                preferred_element_type=jnp.float32)
        + b3_ref[...])
    # Action sampling: mu + exp(logstd) * noise  (all f32, lane-dense VPU/EUP).
    act_ref[...] = mu + jnp.exp(logstd_ref[...]) * noise_ref[...]


def mlp_a2c_policy_forward(obs, params, noise, *, tile_b=1024,
                           matmul_dtype=jnp.bfloat16):
    """obs: (B, obs_dim) f32, noise: (B, act_dim) f32 -> actions (B, act_dim) f32."""
    w1, b1, w2, b2, w3, b3, logstd = params
    B, obs_dim = obs.shape
    H = w1.shape[1]
    act_dim = w3.shape[1]

    # Batch tile: a multiple of 128 lanes, no bigger than the rounded-up batch.
    b_lane = pl.cdiv(B, _LANE) * _LANE
    tile = max(_LANE, (min(tile_b, b_lane) // _LANE) * _LANE)
    b_pad = pl.cdiv(B, tile) * tile
    grid = (b_pad // tile,)

    # One-time layout plumbing: batch -> lane axis, weights -> (out, in),
    # matmul operands -> bf16 (accumulation stays f32 inside the kernel).
    obs_t = jnp.transpose(obs).astype(matmul_dtype)        # (obs_dim, B)
    noise_t = jnp.transpose(noise).astype(jnp.float32)     # (act_dim, B)
    if b_pad != B:
        obs_t = jnp.pad(obs_t, ((0, 0), (0, b_pad - B)))
        noise_t = jnp.pad(noise_t, ((0, 0), (0, b_pad - B)))
    w1_t = jnp.transpose(w1).astype(matmul_dtype)          # (H, obs_dim)
    w2_t = jnp.transpose(w2).astype(matmul_dtype)          # (H, H)
    w3_t = jnp.transpose(w3).astype(matmul_dtype)          # (act_dim, H)
    b1c = b1.reshape(H, 1).astype(jnp.float32)
    b2c = b2.reshape(H, 1).astype(jnp.float32)
    b3c = b3.reshape(act_dim, 1).astype(jnp.float32)
    logstd_c = logstd.reshape(act_dim, 1).astype(jnp.float32)

    # Parameter blocks are constant across grid steps (index_map -> (0, 0)).
    # NOTE: if H is scaled up (512-1024), mark these param specs with
    # pipeline_mode=pl.Buffered(1) to drop the redundant second VMEM copy.
    const = lambda i: (0, 0)
    batched = lambda i: (0, i)
    in_specs = [
        pl.BlockSpec((obs_dim, tile), batched),    # obs (transposed)
        pl.BlockSpec((H, obs_dim), const),         # w1^T
        pl.BlockSpec((H, 1), const),               # b1
        pl.BlockSpec((H, H), const),               # w2^T
        pl.BlockSpec((H, 1), const),               # b2
        pl.BlockSpec((act_dim, H), const),         # w3^T
        pl.BlockSpec((act_dim, 1), const),         # b3
        pl.BlockSpec((act_dim, 1), const),         # logstd
        pl.BlockSpec((act_dim, tile), batched),    # noise (transposed)
    ]
    out_spec = pl.BlockSpec((act_dim, tile), batched)

    out_t = pl.pallas_call(
        _policy_kernel,
        out_shape=jax.ShapeDtypeStruct((act_dim, b_pad), jnp.float32),
        grid_spec=pltpu.PrefetchScalarGridSpec(
            num_scalar_prefetch=0,
            grid=grid,
            in_specs=in_specs,
            out_specs=out_spec,
        ),
        compiler_params=pltpu.CompilerParams(
            # Batch axis is embarrassingly parallel -> megacore sharding (v7x).
            dimension_semantics=("parallel",),
            # Budget well under v7x's 64 MiB physical VMEM even for big tiles.
            vmem_limit_bytes=48 * 1024 * 1024,
        ),
    )(obs_t, w1_t, b1c, w2_t, b2c, w3_t, b3c, logstd_c, noise_t)

    # Back to the module's (B, act_dim) layout; drop batch padding.
    return jnp.transpose(out_t)[:B]


def init_params(key, obs_dim, hidden, act_dim):
    """Deterministic synthetic parameters (shapes match the nn.Module's net)."""
    k1, k2, k3 = jax.random.split(key, 3)
    scale = 0.1
    w1 = scale * jax.random.normal(k1, (obs_dim, hidden), jnp.float32)
    b1 = jnp.zeros((hidden,), jnp.float32)
    w2 = scale * jax.random.normal(k2, (hidden, hidden), jnp.float32)
    b2 = jnp.zeros((hidden,), jnp.float32)
    w3 = scale * jax.random.normal(k3, (hidden, act_dim), jnp.float32)
    b3 = jnp.zeros((act_dim,), jnp.float32)
    logstd = jnp.zeros((act_dim,), jnp.float32)  # nn.Parameter(torch.zeros(act_dim))
    return (w1, b1, w2, b2, w3, b3, logstd)


def reference_forward(obs, params, noise):
    """Pure-JAX reference for correctness."""
    w1, b1, w2, b2, w3, b3, logstd = params
    h1 = jnp.tanh(obs @ w1 + b1)
    h2 = jnp.tanh(h1 @ w2 + b2)
    mu = jnp.tanh(h2 @ w3 + b3)
    return mu + jnp.exp(logstd) * noise


if __name__ == "__main__":
    key = jax.random.PRNGKey(0)
    k_params, k_obs, k_noise = jax.random.split(key, 3)

    B, OBS_DIM, HIDDEN, ACT_DIM = 8, 16, 32, 4

    params = init_params(k_params, OBS_DIM, HIDDEN, ACT_DIM)
    obs = jax.random.normal(k_obs, (B, OBS_DIM), jnp.float32)
    # np.random.normal in the torch module -> deterministic JAX normal noise here.
    noise = jax.random.normal(k_noise, (B, ACT_DIM), jnp.float32)

    ref = reference_forward(obs, params, noise)

    # f32-matmul path: tight check against the pure-JAX reference.
    act_f32 = mlp_a2c_policy_forward(obs, params, noise,
                                     matmul_dtype=jnp.float32)
    act_f32 = jax.block_until_ready(act_f32)
    assert act_f32.shape == (B, ACT_DIM)
    assert jnp.allclose(act_f32, ref, atol=1e-4, rtol=1e-4), "f32 path mismatch"

    # Default fast path (bf16 matmul operands, f32 accumulation): looser check.
    actions = mlp_a2c_policy_forward(obs, params, noise)
    actions = jax.block_until_ready(actions)
    assert actions.shape == (B, ACT_DIM)
    assert jnp.allclose(actions, ref, atol=2e-2, rtol=2e-2), "bf16 path mismatch"

    print("KERNEL_OK")
</pallas_src>

<mosaic_0001>
module attributes {stable_mosaic.version = 11 : i64} {
  func.func @_policy_kernel(%arg0: i32, %arg1: memref<16x128xf32, #tpu.memory_space<vmem>>, %arg2: memref<32x16xf32, #tpu.memory_space<vmem>>, %arg3: memref<32x1xf32, #tpu.memory_space<vmem>>, %arg4: memref<32x32xf32, #tpu.memory_space<vmem>>, %arg5: memref<32x1xf32, #tpu.memory_space<vmem>>, %arg6: memref<4x32xf32, #tpu.memory_space<vmem>>, %arg7: memref<4x1xf32, #tpu.memory_space<vmem>>, %arg8: memref<4x1xf32, #tpu.memory_space<vmem>>, %arg9: memref<4x128xf32, #tpu.memory_space<vmem>>, %arg10: memref<4x128xf32, #tpu.memory_space<vmem>>) attributes {dimension_semantics = [#tpu.dimension_semantics<parallel>], iteration_bounds = array<i64: 1>, scalar_prefetch = 0 : i64, scratch_operands = 0 : i64, tpu.core_type = #tpu.core_type<tc>, window_params = [{transform_indices = @transform_0, window_bounds = array<i64: 16, 128>}, {pipeline_mode = #tpu.pipeline_mode<synchronous>, transform_indices = @transform_1, window_bounds = array<i64: 32, 16>}, {pipeline_mode = #tpu.pipeline_mode<synchronous>, transform_indices = @transform_2, window_bounds = array<i64: 32, 1>}, {pipeline_mode = #tpu.pipeline_mode<synchronous>, transform_indices = @transform_3, window_bounds = array<i64: 32, 32>}, {pipeline_mode = #tpu.pipeline_mode<synchronous>, transform_indices = @transform_4, window_bounds = array<i64: 32, 1>}, {pipeline_mode = #tpu.pipeline_mode<synchronous>, transform_indices = @transform_5, window_bounds = array<i64: 4, 32>}, {pipeline_mode = #tpu.pipeline_mode<synchronous>, transform_indices = @transform_6, window_bounds = array<i64: 4, 1>}, {pipeline_mode = #tpu.pipeline_mode<synchronous>, transform_indices = @transform_7, window_bounds = array<i64: 4, 1>}, {transform_indices = @transform_8, window_bounds = array<i64: 4, 128>}, {transform_indices = @transform_9, window_bounds = array<i64: 4, 128>}]} {
    %c0 = arith.constant 0 : index
    %c0_0 = arith.constant 0 : index
    %0 = vector.load %arg2[%c0, %c0_0] : memref<32x16xf32, #tpu.memory_space<vmem>>, vector<32x16xf32>
    %c0_1 = arith.constant 0 : index
    %c0_2 = arith.constant 0 : index
    %1 = vector.load %arg1[%c0_1, %c0_2] : memref<16x128xf32, #tpu.memory_space<vmem>>, vector<16x128xf32>
    %cst = arith.constant dense<0.000000e+00> : vector<32x128xf32>
    %2 = tpu.matmul %0, %1, %cst {dimension_numbers = #tpu.dot_dimension_numbers<[1], [0], [0], [1], [0, 0, 1, 1], [], []>} : vector<32x16xf32>, vector<16x128xf32>, vector<32x128xf32> -> vector<32x128xf32>
    %c0_3 = arith.constant 0 : index
    %c0_4 = arith.constant 0 : index
    %3 = vector.load %arg3[%c0_3, %c0_4] : memref<32x1xf32, #tpu.memory_space<vmem>>, vector<32x1xf32>
    %4 = vector.broadcast %3 : vector<32x1xf32> to vector<32x128xf32>
    %5 = arith.addf %2, %4 : vector<32x128xf32>
    %6 = math.tanh %5 : vector<32x128xf32>
    %c0_5 = arith.constant 0 : index
    %c0_6 = arith.constant 0 : index
    %7 = vector.load %arg4[%c0_5, %c0_6] : memref<32x32xf32, #tpu.memory_space<vmem>>, vector<32x32xf32>
    %cst_7 = arith.constant dense<0.000000e+00> : vector<32x128xf32>
    %8 = tpu.matmul %7, %6, %cst_7 {dimension_numbers = #tpu.dot_dimension_numbers<[1], [0], [0], [1], [0, 0, 1, 1], [], []>} : vector<32x32xf32>, vector<32x128xf32>, vector<32x128xf32> -> vector<32x128xf32>
    %c0_8 = arith.constant 0 : index
    %c0_9 = arith.constant 0 : index
    %9 = vector.load %arg5[%c0_8, %c0_9] : memref<32x1xf32, #tpu.memory_space<vmem>>, vector<32x1xf32>
    %10 = vector.broadcast %9 : vector<32x1xf32> to vector<32x128xf32>
    %11 = arith.addf %8, %10 : vector<32x128xf32>
    %12 = math.tanh %11 : vector<32x128xf32>
    %c0_10 = arith.constant 0 : index
    %c0_11 = arith.constant 0 : index
    %13 = vector.load %arg6[%c0_10, %c0_11] : memref<4x32xf32, #tpu.memory_space<vmem>>, vector<4x32xf32>
    %cst_12 = arith.constant dense<0.000000e+00> : vector<4x128xf32>
    %14 = tpu.matmul %13, %12, %cst_12 {dimension_numbers = #tpu.dot_dimension_numbers<[1], [0], [0], [1], [0, 0, 1, 1], [], []>} : vector<4x32xf32>, vector<32x128xf32>, vector<4x128xf32> -> vector<4x128xf32>
    %c0_13 = arith.constant 0 : index
    %c0_14 = arith.constant 0 : index
    %15 = vector.load %arg7[%c0_13, %c0_14] : memref<4x1xf32, #tpu.memory_space<vmem>>, vector<4x1xf32>
    %16 = vector.broadcast %15 : vector<4x1xf32> to vector<4x128xf32>
    %17 = arith.addf %14, %16 : vector<4x128xf32>
    %18 = math.tanh %17 : vector<4x128xf32>
    %c0_15 = arith.constant 0 : index
    %c0_16 = arith.constant 0 : index
    %19 = vector.load %arg8[%c0_15, %c0_16] : memref<4x1xf32, #tpu.memory_space<vmem>>, vector<4x1xf32>
    %20 = math.exp %19 : vector<4x1xf32>
    %c0_17 = arith.constant 0 : index
    %c0_18 = arith.constant 0 : index
    %21 = vector.load %arg9[%c0_17, %c0_18] : memref<4x128xf32, #tpu.memory_space<vmem>>, vector<4x128xf32>
    %22 = vector.broadcast %20 : vector<4x1xf32> to vector<4x128xf32>
    %23 = arith.mulf %22, %21 : vector<4x128xf32>
    %24 = arith.addf %18, %23 : vector<4x128xf32>
    %c0_19 = arith.constant 0 : index
    %c0_20 = arith.constant 0 : index
    %25 = vector.load %arg10[%c0_19, %c0_20] : memref<4x128xf32, #tpu.memory_space<vmem>>, vector<4x128xf32>
    tpu.vector_store %arg10[%c0_19, %c0_20], %24 {strides = array<i32>} : memref<4x128xf32, #tpu.memory_space<vmem>>, vector<4x128xf32>,
    return
  }
  func.func @transform_0(%arg0: i32) -> (i32, i32) {
    %c0_i32 = arith.constant 0 : i32
    %c0_i32_0 = arith.constant 0 : i32
    return %c0_i32, %arg0 : i32, i32
  }
  func.func @transform_1(%arg0: i32) -> (i32, i32) {
    %c0_i32 = arith.constant 0 : i32
    %c0_i32_0 = arith.constant 0 : i32
    %c0_i32_1 = arith.constant 0 : i32
    return %c0_i32, %c0_i32_0 : i32, i32
  }
  func.func @transform_2(%arg0: i32) -> (i32, i32) {
    %c0_i32 = arith.constant 0 : i32
    %c0_i32_0 = arith.constant 0 : i32
    %c0_i32_1 = arith.constant 0 : i32
    return %c0_i32, %c0_i32_0 : i32, i32
  }
  func.func @transform_3(%arg0: i32) -> (i32, i32) {
    %c0_i32 = arith.constant 0 : i32
    %c0_i32_0 = arith.constant 0 : i32
    %c0_i32_1 = arith.constant 0 : i32
    return %c0_i32, %c0_i32_0 : i32, i32
  }
  func.func @transform_4(%arg0: i32) -> (i32, i32) {
    %c0_i32 = arith.constant 0 : i32
    %c0_i32_0 = arith.constant 0 : i32
    %c0_i32_1 = arith.constant 0 : i32
    return %c0_i32, %c0_i32_0 : i32, i32
  }
  func.func @transform_5(%arg0: i32) -> (i32, i32) {
    %c0_i32 = arith.constant 0 : i32
    %c0_i32_0 = arith.constant 0 : i32
    %c0_i32_1 = arith.constant 0 : i32
    return %c0_i32, %c0_i32_0 : i32, i32
  }
  func.func @transform_6(%arg0: i32) -> (i32, i32) {
    %c0_i32 = arith.constant 0 : i32
    %c0_i32_0 = arith.constant 0 : i32
    %c0_i32_1 = arith.constant 0 : i32
    return %c0_i32, %c0_i32_0 : i32, i32
  }
  func.func @transform_7(%arg0: i32) -> (i32, i32) {
    %c0_i32 = arith.constant 0 : i32
    %c0_i32_0 = arith.constant 0 : i32
    %c0_i32_1 = arith.constant 0 : i32
    return %c0_i32, %c0_i32_0 : i32, i32
  }
  func.func @transform_8(%arg0: i32) -> (i32, i32) {
    %c0_i32 = arith.constant 0 : i32
    %c0_i32_0 = arith.constant 0 : i32
    return %c0_i32, %arg0 : i32, i32
  }
  func.func @transform_9(%arg0: i32) -> (i32, i32) {
    %c0_i32 = arith.constant 0 : i32
    %c0_i32_0 = arith.constant 0 : i32
    return %c0_i32, %arg0 : i32, i32
  }
}

</mosaic_0001>

<bundles_post_ra>
// kernel: tpu_custom_call.1
= control target key start
LH: loop header
LB: loop body
LE: loop exit
PB: predicated region body
PF: predicated region fallthrough
CT: control target
= control target key end

     0   :  { %vm63_vm0 = vcmask 130048   ;;  %v513_v4 = vmov 0   ;;  %s645_s0 = inlined_call_operand.vmem [shape: f32[16,128], index: 0, kind: input, shape index: {}]   ;;  %s646_s1 = inlined_call_operand.vmem [shape: f32[32,16], index: 1, kind: input, shape index: {}]   ;;  %s647_s2 = inlined_call_operand.vmem [shape: f32[32,1], index: 2, kind: input, shape index: {}]   ;;  %s648_s3 = inlined_call_operand.vmem [shape: f32[32,32], index: 3, kind: input, shape index: {}]   ;;  %s649_s4 = inlined_call_operand.vmem [shape: f32[32,1], index: 4, kind: input, shape index: {}]   ;;  %s650_s5 = inlined_call_operand.vmem [shape: f32[4,32], index: 5, kind: input, shape index: {}]   ;;  %s651_s6 = inlined_call_operand.vmem [shape: f32[4,1], index: 6, kind: input, shape index: {}]   ;;  %s652_s7 = inlined_call_operand.vmem [shape: f32[4,1], index: 7, kind: input, shape index: {}]   ;;  %s653_s8 = inlined_call_operand.vmem [shape: f32[4,128], index: 8, kind: input, shape index: {}]   ;;  %s654_s9 = inlined_call_operand.hbm [shape: f32[4,128], index: 9, kind: output, shape index: {}]  }
   0x1   :  { %v38_v0 = vld [vmem:[%s645_s0 + $0x8] sm:$0xff]  ;;  %v37_v1 = vld [vmem:[%s645_s0] sm:$0xff]  ;;  %469 = vset.pattern.permute.xlu0 %v513_v4  ;;  %v42_v5 = vld [vmem:[%s647_s2 + $0x18] sm:$0xff]  ;;  %470 = vset.pattern.permute.xlu1 %v513_v4 }
   0x2   :  { %v33_v2 = vld [vmem:[%s646_s1] sm:$0xff]  ;;  %430 = vmatprep.subr.mxu0 %v38_v0  ;;  %v34_v3 = vld [vmem:[%s646_s1 + $0x8] sm:$0xff]  ;;  %v35_v7 = vld [vmem:[%s646_s1 + $0x10] sm:$0xff]  ;;  %60 = vperm.xlu0 %469, %v42_v5  }
   0x3   :  { %434 = vmatprep.mubr.msk.f32.mxu0 %vm63_vm0, %v33_v2  ;;  %431 = vmatpush3.msra.mxu0 %v38_v0  ;;  %v40_v6 = vld [vmem:[%s647_s2 + $0x8] sm:$0xff]  ;;  %v41_v8 = vld [vmem:[%s647_s2 + $0x10] sm:$0xff]  ;;  %v376_v9 = vld [vmem:[%s652_s7] sm:$0xf] }
   0x4   :  { %432 = vmatprep.subr.mxu0 %v37_v1  ;;  %50 = vperm.xlu1 %470, %v40_v6  }
   0x5   :  { %433 = vmatpush3.msra.mxu0 %v37_v1 }
   0x6   :  { %435 = vmatmul.mubr.msk.f32.vlgmr.msra.gmra.mxu0 %vm63_vm0, %v34_v3 }
   0x7   :  { %14 = vsyncpa [#allocation3], 0  ;;  %437 = vmatprep.mubr.msk.f32.mxu0 %vm63_vm0, %v35_v7  ;;  %v36_v10 = vld [vmem:[%s646_s1 + $0x18] sm:$0xff]  ;;  %v39_v11 = vld [vmem:[%s647_s2] sm:$0xff]  ;;  %v377_v12 = vmul.f32 1.442695, %v376_v9  ;;  %55 = vperm.xlu0 %469, %v41_v8  }
   0x8   :  { %v172_v13 = vld [vmem:[%s649_s4 + $0x18] sm:$0xff]  ;;  %45 = vperm.xlu1 %470, %v39_v11   ;;  %v171_v14 = vld [vmem:[%s649_s4 + $0x10] sm:$0xff]  ;;  %v170_v15 = vld [vmem:[%s649_s4 + $0x8] sm:$0xff]  ;;  %vm193_vm1 = vcmask 261120   ;;  %v514_v39 = vmov 0.0   ;;  %vm515_vm2 = vmmov 0  }
   0x9   :  { %471 = vpow2.f32 %v377_v12  ;;  %v169_v16 = vld [vmem:[%s649_s4] sm:$0xff]  ;;  %v166_v36 = vld [vmem:[%s648_s3 + $0x8] sm:$0xff]  ;;  %v167_v37 = vld [vmem:[%s648_s3 + $0x10] sm:$0xff]  ;;  %454 = vmatprep.subr.mxu0 %v514_v39  ;;  %s516_s24 = smov [#allocation2]  }
   0xa   :  { %438 = vmatmul.mubr.msk.f32.gmra.mxu0 %vm63_vm0, %v36_v10  ;;  %v296_v17 = vld [vmem:[%s651_s6] sm:$0xf]  ;;  %v168_v38 = vld [vmem:[%s648_s3 + $0x18] sm:$0xff]  ;;  %s394_s25 = sshll.u32 %s516_s24, 4  ;;  %s395_s25 = int_to_ptr.vmem [resolvable:$true] %s394_s25 }
   0xb   :  { %190 = vperm.xlu0 %469, %v172_v13   ;;  %v165_v19 = vld [vmem:[%s648_s3] sm:$0xff]  ;;  %462 = vmatprep.mubr.msk.f32.mxu0 %vm515_vm2, %v514_v39  ;;  %p496_p1 = scmp.lt.s32.totalorder %s395_s25, %s395_s25 }
   0xc   :  { %185 = vperm.xlu1 %470, %v171_v14   ;;  %448 = vmatprep.mubr.msk.f32.mxu1 %vm193_vm1, %v165_v19  ;;  %v295_v55 = vld [vmem:[%s650_s5] sm:$0xf]  ;;  %s491_s5 = scalar_lea.vmem %s395_s25, 64 }
   0xd   :  { %v379_v61 = vld [vmem:[%s653_s8] sm:$0xf]  ;;  %p492_p0 = scmp.ne.s32.totalorder %s395_s25, %s491_s5  ;;  %p497_p2 = scmp.lt.s32.totalorder %s491_s5, %s491_s5 }
   0xf   :  { %180 = vperm.xlu0 %469, %v170_v15   ;;  %p498_p3 = por %p497_p2, %p496_p1 }
  0x10   :  { %175 = vperm.xlu1 %470, %v169_v16  }
  0x11   :  { %p499_p4 = pnand %p498_p3, %p492_p0 }
  0x13   :  { %299 = vperm.xlu0 %469, %v296_v17  }
  0x16   :  { %v472_v18 = vpop.eup %471 }
  0x17   :  { %382 = vperm.xlu1 %470, %v472_v18  }
  0x7d   :  { %v61_v20 = vpop.permute.xlu0 %60 }
  0x7f   :  { %v51_v22 = vpop.permute.xlu1 %50 }
  0x82   :  { %v56_v26 = vpop.permute.xlu0 %55 }
  0x83   :  { %v46_v30 = vpop.permute.xlu1 %45 }
  0x86   :  { %v191_v40 = vpop.permute.xlu0 %190 }
  0x87   :  { %v186_v42 = vpop.permute.xlu1 %185 }
  0x8a   :  { %v181_v46 = vpop.permute.xlu0 %180 }
  0x8b   :  { %v176_v50 = vpop.permute.xlu1 %175 }
  0x8e   :  { %v300_v57 = vpop.permute.xlu0 %299 }
  0x92   :  { %v383_v62 = vpop.permute.xlu1 %382 }
  0x93   :  { %v385_v63 = vmul.f32 %v383_v62, %v379_v61 }
  0xc6   :  { %v436_v21 = vpop.f32.mrf.mxu0 }
  0xc7   :  { %v148_v28 = vadd.f32 %v436_v21, %v51_v22 }
  0xc8   :  { %v142_v23 = vpop.f32.mrf.mxu0 }
  0xc9   :  { %v143_v31 = vadd.f32 %v142_v23, %v46_v30 }
  0xca   :  { %v439_v24 = vpop.f32.mrf.mxu0 }
  0xcb   :  { %v158_v25 = vadd.f32 %v439_v24, %v61_v20 }
  0xcc   :  { %v152_v27 = vpop.f32.mrf.mxu0 }
  0xcd   :  { %473 = vtanh.f32 %v158_v25  ;;  %v153_v29 = vadd.f32 %v152_v27, %v56_v26 }
  0xcf   :  { %475 = vtanh.f32 %v153_v29 }
  0xd0   :  { %477 = vtanh.f32 %v148_v28 }
  0xd1   :  { %479 = vtanh.f32 %v143_v31 }
  0xda   :  { %v474_v32 = vpop.eup %473 }
  0xdb   :  { %440 = vmatprep.subr.mxu1 %v474_v32 }
  0xdc   :  { %v476_v33 = vpop.eup %475  ;;  %441 = vmatpush3.msra.mxu1 %v474_v32 }
  0xdd   :  { %442 = vmatprep.subr.mxu1 %v476_v33  ;;  %v478_v34 = vpop.eup %477 }
  0xde   :  { %443 = vmatpush3.msra.mxu1 %v476_v33  ;;  %v480_v35 = vpop.eup %479 }
  0xdf   :  { %444 = vmatprep.subr.mxu1 %v478_v34 }
  0xe0   :  { %445 = vmatpush3.msra.mxu1 %v478_v34 }
  0xe1   :  { %446 = vmatprep.subr.mxu1 %v480_v35 }
  0xe2   :  { %447 = vmatpush3.msra.mxu1 %v480_v35 }
  0xe3   :  { %449 = vmatmul.mubr.msk.f32.vlgmr.msra.gmra.mxu1 %vm193_vm1, %v166_v36 }
  0xe4   :  { %451 = vmatprep.mubr.msk.f32.mxu1 %vm193_vm1, %v167_v37 }
  0xe7   :  { %452 = vmatmul.mubr.msk.f32.gmra.mxu1 %vm193_vm1, %v168_v38 }
 0x1a3   :  { %v450_v41 = vpop.f32.mrf.mxu1 }
 0x1a4   :  { %v278_v48 = vadd.f32 %v450_v41, %v181_v46 }
 0x1a5   :  { %v272_v43 = vpop.f32.mrf.mxu1 }
 0x1a6   :  { %v273_v51 = vadd.f32 %v272_v43, %v176_v50 }
 0x1a7   :  { %v453_v44 = vpop.f32.mrf.mxu1 }
 0x1a8   :  { %v288_v45 = vadd.f32 %v453_v44, %v191_v40 }
 0x1a9   :  { %v282_v47 = vpop.f32.mrf.mxu1 }
 0x1aa   :  { %481 = vtanh.f32 %v288_v45  ;;  %v283_v49 = vadd.f32 %v282_v47, %v186_v42 }
 0x1ac   :  { %483 = vtanh.f32 %v283_v49 }
 0x1ad   :  { %485 = vtanh.f32 %v278_v48 }
 0x1ae   :  { %487 = vtanh.f32 %v273_v51 }
 0x1b7   :  { %v482_v52 = vpop.eup %481 }
 0x1b8   :  { %455 = vmatpush3.msra.mxu0 %v482_v52 }
 0x1b9   :  { %v484_v53 = vpop.eup %483  ;;  %456 = vmatprep.subr.mxu0 %v514_v39 }
 0x1ba   :  { %457 = vmatpush3.msra.mxu0 %v484_v53  ;;  %v486_v54 = vpop.eup %485 }
 0x1bb   :  { %458 = vmatprep.subr.mxu0 %v514_v39  ;;  %v488_v56 = vpop.eup %487 }
 0x1bc   :  { %459 = vmatpush3.msra.mxu0 %v486_v54 }
 0x1bd   :  { %460 = vmatprep.subr.mxu0 %v514_v39 }
 0x1be   :  { %461 = vmatpush3.msra.mxu0 %v488_v56 }
 0x1bf   :  { %463 = vmatmul.mubr.msk.f32.vlgmr.msra.gmra.mxu0 %vm193_vm1, %v295_v55 }
 0x27f   :  { %v371_v58 = vpop.f32.mrf.mxu0 }
 0x280   :  { %v372_v59 = vadd.f32 %v371_v58, %v300_v57 }
 0x281   :  { %v464_v60 = vpop.f32.mrf.mxu0 }
 0x282   :  { %489 = vtanh.f32 %v372_v59 }
 0x28f   :  { %v490_v0 = vpop.eup %489 }
 0x290   :  { %v386_v1 = vadd.f32 %v490_v0, %v385_v63 }
 0x292   :  { %387 = vst [vmem:[#allocation2] sm:$0xf] %v386_v1 }
 0x293   :  { %502 = shalt.err (!%p499_p4)
}
 0x294   :  { %397 = dma.vmem_to_hbm [thread:$0]  %s395_s25, 64, %s654_s9, [#allocation3]  }
 0x295   :  { %511 = dma.done.wait [#allocation3], 64  }
 0x296   :  { %512 = vsyncadd [#allocation3], 4294967232 }
 0x297   :  { %401 = vsyncpa [#allocation3], 1 }

</bundles_post_ra>
